<compile_context>
chip_gen: v7x
topology: tpu7x:2x2x1
jax: 0.10.0
libtpu: 0.0.40
codegen_flags: <defaults>
</compile_context>

<pallas_src>
import functools

import jax
import jax.numpy as jnp
from jax.experimental import pallas as pl
from jax.experimental.pallas import tpu as pltpu  # noqa: F401  (TPU backend)


_LANES = 128


def _round_up(v, m):
    return (v + m - 1) // m * m


# ---------------------------------------------------------------------------
# Fused kernel: mask multiply + L GIN layers, all operands VMEM-resident.
# ---------------------------------------------------------------------------

def _gin_enc_kernel(x_ref, mask_ref, adj_ref,
                    w1x_ref, w1a_ref, b1_ref, w2_ref, b2_ref,
                    o_ref, *, n_layers):
    # x: (M, Dp)  mask: (M, 1)  adj: (M, M)  weights stacked along layer axis.
    out = x_ref[...] * mask_ref[...]                 # fused mask multiply
    adj = adj_ref[...]

    for i in range(n_layers):                        # static unroll over layers
        # Neighborhood aggregation for all batch elements in one MXU matmul
        # (adj is block-diagonal kron(I_B, adj_single)).
        agg = jnp.dot(adj, out, preferred_element_type=jnp.float32)

        # First Linear of the MLP, concat-free:
        #   concat([out, agg], -1) @ W1 == out @ W1[:D] + agg @ W1[D:]
        h = (jnp.dot(out, w1x_ref[i], preferred_element_type=jnp.float32)
             + jnp.dot(agg, w1a_ref[i], preferred_element_type=jnp.float32)
             + b1_ref[i])
        h = jnp.maximum(h, 0.0)                      # mlp_act = ReLU

        out = jnp.dot(h, w2_ref[i], preferred_element_type=jnp.float32) + b2_ref[i]
        if i < n_layers - 1:                         # outer activation (act_name)
            out = jnp.maximum(out, 0.0)

    o_ref[...] = out.astype(o_ref.dtype)


# ---------------------------------------------------------------------------
# Wrapper
# ---------------------------------------------------------------------------

def gin_enc_forward(x, mask, adj, params):
    """Fused GIN_Enc forward.

    x:    (B, N, D)          mask: (B, N)          adj: (N, N)
    params: list of (W1, b1, W2, b2) per GIN layer with
            W1: (2D, H), b1: (1, H), W2: (H, D), b2: (1, D).
    """
    B, N, D = x.shape
    L = len(params)
    H = params[0][0].shape[1]
    M = B * N                                   # fold batch into matmul rows
    Dp = _round_up(D, _LANES)                   # lane-dense feature dims
    Hp = _round_up(H, _LANES)
    f32 = jnp.float32

    # Activations: (B*N, Dp), zero-padded feature lanes.
    x_pad = jnp.zeros((M, Dp), f32).at[:, :D].set(x.reshape(M, D).astype(f32))
    mask_flat = mask.reshape(M, 1).astype(f32)

    # Block-diagonal adjacency: per-batch adj @ x becomes one 2-D matmul.
    adj_big = jnp.kron(jnp.eye(B, dtype=f32), adj.astype(f32))        # (M, M)

    # Stack, split (concat elimination) and zero-pad the per-layer weights.
    w1x = jnp.zeros((L, Dp, Hp), f32)
    w1a = jnp.zeros((L, Dp, Hp), f32)
    b1s = jnp.zeros((L, 1, Hp), f32)
    w2s = jnp.zeros((L, Hp, Dp), f32)
    b2s = jnp.zeros((L, 1, Dp), f32)
    for i, (w1, b1, w2, b2) in enumerate(params):
        w1x = w1x.at[i, :D, :H].set(w1[:D].astype(f32))    # rows acting on x
        w1a = w1a.at[i, :D, :H].set(w1[D:].astype(f32))    # rows acting on agg
        b1s = b1s.at[i, 0, :H].set(b1.reshape(-1).astype(f32))
        w2s = w2s.at[i, :H, :D].set(w2.astype(f32))
        b2s = b2s.at[i, 0, :D].set(b2.reshape(-1).astype(f32))

    flops = 2 * L * M * (M * Dp + 3 * Dp * Hp)
    bytes_accessed = 4 * (2 * M * Dp + M + M * M
                          + L * (2 * Dp * Hp + Hp + Hp * Dp + Dp))

    out_pad = pl.pallas_call(
        functools.partial(_gin_enc_kernel, n_layers=L),
        out_shape=jax.ShapeDtypeStruct((M, Dp), x.dtype),
        cost_estimate=pl.CostEstimate(flops=flops, transcendentals=0,
                                      bytes_accessed=bytes_accessed),
    )(x_pad, mask_flat, adj_big, w1x, w1a, b1s, w2s, b2s)

    # Strip the lane padding and restore (B, N, D).
    return out_pad[:, :D].reshape(B, N, D)


# ---------------------------------------------------------------------------
# Deterministic parameter init + driver
# ---------------------------------------------------------------------------

def init_params(key, gin_layers, dim, dtype=jnp.float32):
    """Each layer's MLP: Linear(2*dim -> 2*dim), ReLU, Linear(2*dim -> dim)."""
    params = []
    for _ in range(gin_layers):
        key, k1, k2, k3, k4 = jax.random.split(key, 5)
        w1 = jax.random.normal(k1, (2 * dim, 2 * dim), dtype) * 0.1
        b1 = jax.random.normal(k2, (1, 2 * dim), dtype) * 0.01
        w2 = jax.random.normal(k3, (2 * dim, dim), dtype) * 0.1
        b2 = jax.random.normal(k4, (1, dim), dtype) * 0.01
        params.append((w1, b1, w2, b2))
    return params


if __name__ == "__main__":
    B, N, D = 2, 16, 32       # batch, nodes, feature dim
    GIN_LAYERS = 3            # 2 (conv + act) + 1 final conv
    dtype = jnp.float32

    key = jax.random.PRNGKey(0)
    key, kx, kadj, kmask, kp = jax.random.split(key, 5)

    x = jax.random.normal(kx, (B, N, D), dtype)

    # adj_t buffer: deterministic symmetric 0/1 adjacency (N, N)
    a = (jax.random.uniform(kadj, (N, N)) > 0.5).astype(dtype)
    adj = jnp.maximum(a, a.T)

    # node mask (B, N) of 0/1
    mask = (jax.random.uniform(kmask, (B, N)) > 0.2).astype(dtype)

    params = init_params(kp, GIN_LAYERS, D, dtype)

    out = gin_enc_forward(x, mask, adj, params)
    out = jax.block_until_ready(out)
    assert out.shape == (B, N, D), out.shape
    print("KERNEL_OK")
</pallas_src>

<mosaic_0001>
module attributes {stable_mosaic.version = 11 : i64} {
  func.func @_gin_enc_kernel(%arg0: memref<32x128xf32, #tpu.memory_space<vmem>>, %arg1: memref<32x1xf32, #tpu.memory_space<vmem>>, %arg2: memref<32x32xf32, #tpu.memory_space<vmem>>, %arg3: memref<3x128x128xf32, #tpu.memory_space<vmem>>, %arg4: memref<3x128x128xf32, #tpu.memory_space<vmem>>, %arg5: memref<3x1x128xf32, #tpu.memory_space<vmem>>, %arg6: memref<3x128x128xf32, #tpu.memory_space<vmem>>, %arg7: memref<3x1x128xf32, #tpu.memory_space<vmem>>, %arg8: memref<32x128xf32, #tpu.memory_space<vmem>>) attributes {dimension_semantics = [], scalar_prefetch = 0 : i64, scratch_operands = 0 : i64, tpu.core_type = #tpu.core_type<tc>} {
    %c0 = arith.constant 0 : index
    %c0_0 = arith.constant 0 : index
    %0 = vector.load %arg0[%c0, %c0_0] : memref<32x128xf32, #tpu.memory_space<vmem>>, vector<32x128xf32>
    %c0_1 = arith.constant 0 : index
    %c0_2 = arith.constant 0 : index
    %1 = vector.load %arg1[%c0_1, %c0_2] : memref<32x1xf32, #tpu.memory_space<vmem>>, vector<32x1xf32>
    %2 = vector.broadcast %1 : vector<32x1xf32> to vector<32x128xf32>
    %3 = arith.mulf %0, %2 : vector<32x128xf32>
    %c0_3 = arith.constant 0 : index
    %c0_4 = arith.constant 0 : index
    %4 = vector.load %arg2[%c0_3, %c0_4] : memref<32x32xf32, #tpu.memory_space<vmem>>, vector<32x32xf32>
    %cst = arith.constant dense<0.000000e+00> : vector<32x128xf32>
    %5 = tpu.matmul %4, %3, %cst {dimension_numbers = #tpu.dot_dimension_numbers<[1], [0], [0], [1], [0, 0, 1, 1], [], []>} : vector<32x32xf32>, vector<32x128xf32>, vector<32x128xf32> -> vector<32x128xf32>
    %c0_5 = arith.constant 0 : index
    %c0_6 = arith.constant 0 : index
    %c0_7 = arith.constant 0 : index
    %6 = vector.load %arg3[%c0_5, %c0_6, %c0_7] : memref<3x128x128xf32, #tpu.memory_space<vmem>>, vector<1x128x128xf32>
    %7 = vector.shape_cast %6 : vector<1x128x128xf32> to vector<128x128xf32>
    %cst_8 = arith.constant dense<0.000000e+00> : vector<32x128xf32>
    %8 = tpu.matmul %3, %7, %cst_8 {dimension_numbers = #tpu.dot_dimension_numbers<[1], [0], [0], [1], [0, 0, 1, 1], [], []>} : vector<32x128xf32>, vector<128x128xf32>, vector<32x128xf32> -> vector<32x128xf32>
    %c0_9 = arith.constant 0 : index
    %c0_10 = arith.constant 0 : index
    %c0_11 = arith.constant 0 : index
    %9 = vector.load %arg4[%c0_9, %c0_10, %c0_11] : memref<3x128x128xf32, #tpu.memory_space<vmem>>, vector<1x128x128xf32>
    %10 = vector.shape_cast %9 : vector<1x128x128xf32> to vector<128x128xf32>
    %cst_12 = arith.constant dense<0.000000e+00> : vector<32x128xf32>
    %11 = tpu.matmul %5, %10, %cst_12 {dimension_numbers = #tpu.dot_dimension_numbers<[1], [0], [0], [1], [0, 0, 1, 1], [], []>} : vector<32x128xf32>, vector<128x128xf32>, vector<32x128xf32> -> vector<32x128xf32>
    %12 = arith.addf %8, %11 : vector<32x128xf32>
    %c0_13 = arith.constant 0 : index
    %c0_14 = arith.constant 0 : index
    %c0_15 = arith.constant 0 : index
    %13 = vector.load %arg5[%c0_13, %c0_14, %c0_15] : memref<3x1x128xf32, #tpu.memory_space<vmem>>, vector<1x1x128xf32>
    %14 = vector.shape_cast %13 : vector<1x1x128xf32> to vector<1x128xf32>
    %15 = vector.broadcast %14 : vector<1x128xf32> to vector<32x128xf32>
    %16 = arith.addf %12, %15 : vector<32x128xf32>
    %cst_16 = arith.constant 0.000000e+00 : f32
    %17 = vector.broadcast %cst_16 : f32 to vector<32x128xf32>
    %18 = arith.maximumf %16, %17 : vector<32x128xf32>
    %c0_17 = arith.constant 0 : index
    %c0_18 = arith.constant 0 : index
    %c0_19 = arith.constant 0 : index
    %19 = vector.load %arg6[%c0_17, %c0_18, %c0_19] : memref<3x128x128xf32, #tpu.memory_space<vmem>>, vector<1x128x128xf32>
    %20 = vector.shape_cast %19 : vector<1x128x128xf32> to vector<128x128xf32>
    %cst_20 = arith.constant dense<0.000000e+00> : vector<32x128xf32>
    %21 = tpu.matmul %18, %20, %cst_20 {dimension_numbers = #tpu.dot_dimension_numbers<[1], [0], [0], [1], [0, 0, 1, 1], [], []>} : vector<32x128xf32>, vector<128x128xf32>, vector<32x128xf32> -> vector<32x128xf32>
    %c0_21 = arith.constant 0 : index
    %c0_22 = arith.constant 0 : index
    %c0_23 = arith.constant 0 : index
    %22 = vector.load %arg7[%c0_21, %c0_22, %c0_23] : memref<3x1x128xf32, #tpu.memory_space<vmem>>, vector<1x1x128xf32>
    %23 = vector.shape_cast %22 : vector<1x1x128xf32> to vector<1x128xf32>
    %24 = vector.broadcast %23 : vector<1x128xf32> to vector<32x128xf32>
    %25 = arith.addf %21, %24 : vector<32x128xf32>
    %cst_24 = arith.constant 0.000000e+00 : f32
    %26 = vector.broadcast %cst_24 : f32 to vector<32x128xf32>
    %27 = arith.maximumf %25, %26 : vector<32x128xf32>
    %cst_25 = arith.constant dense<0.000000e+00> : vector<32x128xf32>
    %28 = tpu.matmul %4, %27, %cst_25 {dimension_numbers = #tpu.dot_dimension_numbers<[1], [0], [0], [1], [0, 0, 1, 1], [], []>} : vector<32x32xf32>, vector<32x128xf32>, vector<32x128xf32> -> vector<32x128xf32>
    %c1 = arith.constant 1 : index
    %c0_26 = arith.constant 0 : index
    %c0_27 = arith.constant 0 : index
    %29 = vector.load %arg3[%c1, %c0_26, %c0_27] : memref<3x128x128xf32, #tpu.memory_space<vmem>>, vector<1x128x128xf32>
    %30 = vector.shape_cast %29 : vector<1x128x128xf32> to vector<128x128xf32>
    %cst_28 = arith.constant dense<0.000000e+00> : vector<32x128xf32>
    %31 = tpu.matmul %27, %30, %cst_28 {dimension_numbers = #tpu.dot_dimension_numbers<[1], [0], [0], [1], [0, 0, 1, 1], [], []>} : vector<32x128xf32>, vector<128x128xf32>, vector<32x128xf32> -> vector<32x128xf32>
    %c1_29 = arith.constant 1 : index
    %c0_30 = arith.constant 0 : index
    %c0_31 = arith.constant 0 : index
    %32 = vector.load %arg4[%c1_29, %c0_30, %c0_31] : memref<3x128x128xf32, #tpu.memory_space<vmem>>, vector<1x128x128xf32>
    %33 = vector.shape_cast %32 : vector<1x128x128xf32> to vector<128x128xf32>
    %cst_32 = arith.constant dense<0.000000e+00> : vector<32x128xf32>
    %34 = tpu.matmul %28, %33, %cst_32 {dimension_numbers = #tpu.dot_dimension_numbers<[1], [0], [0], [1], [0, 0, 1, 1], [], []>} : vector<32x128xf32>, vector<128x128xf32>, vector<32x128xf32> -> vector<32x128xf32>
    %35 = arith.addf %31, %34 : vector<32x128xf32>
    %c1_33 = arith.constant 1 : index
    %c0_34 = arith.constant 0 : index
    %c0_35 = arith.constant 0 : index
    %36 = vector.load %arg5[%c1_33, %c0_34, %c0_35] : memref<3x1x128xf32, #tpu.memory_space<vmem>>, vector<1x1x128xf32>
    %37 = vector.shape_cast %36 : vector<1x1x128xf32> to vector<1x128xf32>
    %38 = vector.broadcast %37 : vector<1x128xf32> to vector<32x128xf32>
    %39 = arith.addf %35, %38 : vector<32x128xf32>
    %cst_36 = arith.constant 0.000000e+00 : f32
    %40 = vector.broadcast %cst_36 : f32 to vector<32x128xf32>
    %41 = arith.maximumf %39, %40 : vector<32x128xf32>
    %c1_37 = arith.constant 1 : index
    %c0_38 = arith.constant 0 : index
    %c0_39 = arith.constant 0 : index
    %42 = vector.load %arg6[%c1_37, %c0_38, %c0_39] : memref<3x128x128xf32, #tpu.memory_space<vmem>>, vector<1x128x128xf32>
    %43 = vector.shape_cast %42 : vector<1x128x128xf32> to vector<128x128xf32>
    %cst_40 = arith.constant dense<0.000000e+00> : vector<32x128xf32>
    %44 = tpu.matmul %41, %43, %cst_40 {dimension_numbers = #tpu.dot_dimension_numbers<[1], [0], [0], [1], [0, 0, 1, 1], [], []>} : vector<32x128xf32>, vector<128x128xf32>, vector<32x128xf32> -> vector<32x128xf32>
    %c1_41 = arith.constant 1 : index
    %c0_42 = arith.constant 0 : index
    %c0_43 = arith.constant 0 : index
    %45 = vector.load %arg7[%c1_41, %c0_42, %c0_43] : memref<3x1x128xf32, #tpu.memory_space<vmem>>, vector<1x1x128xf32>
    %46 = vector.shape_cast %45 : vector<1x1x128xf32> to vector<1x128xf32>
    %47 = vector.broadcast %46 : vector<1x128xf32> to vector<32x128xf32>
    %48 = arith.addf %44, %47 : vector<32x128xf32>
    %cst_44 = arith.constant 0.000000e+00 : f32
    %49 = vector.broadcast %cst_44 : f32 to vector<32x128xf32>
    %50 = arith.maximumf %48, %49 : vector<32x128xf32>
    %cst_45 = arith.constant dense<0.000000e+00> : vector<32x128xf32>
    %51 = tpu.matmul %4, %50, %cst_45 {dimension_numbers = #tpu.dot_dimension_numbers<[1], [0], [0], [1], [0, 0, 1, 1], [], []>} : vector<32x32xf32>, vector<32x128xf32>, vector<32x128xf32> -> vector<32x128xf32>
    %c2 = arith.constant 2 : index
    %c0_46 = arith.constant 0 : index
    %c0_47 = arith.constant 0 : index
    %52 = vector.load %arg3[%c2, %c0_46, %c0_47] : memref<3x128x128xf32, #tpu.memory_space<vmem>>, vector<1x128x128xf32>
    %53 = vector.shape_cast %52 : vector<1x128x128xf32> to vector<128x128xf32>
    %cst_48 = arith.constant dense<0.000000e+00> : vector<32x128xf32>
    %54 = tpu.matmul %50, %53, %cst_48 {dimension_numbers = #tpu.dot_dimension_numbers<[1], [0], [0], [1], [0, 0, 1, 1], [], []>} : vector<32x128xf32>, vector<128x128xf32>, vector<32x128xf32> -> vector<32x128xf32>
    %c2_49 = arith.constant 2 : index
    %c0_50 = arith.constant 0 : index
    %c0_51 = arith.constant 0 : index
    %55 = vector.load %arg4[%c2_49, %c0_50, %c0_51] : memref<3x128x128xf32, #tpu.memory_space<vmem>>, vector<1x128x128xf32>
    %56 = vector.shape_cast %55 : vector<1x128x128xf32> to vector<128x128xf32>
    %cst_52 = arith.constant dense<0.000000e+00> : vector<32x128xf32>
    %57 = tpu.matmul %51, %56, %cst_52 {dimension_numbers = #tpu.dot_dimension_numbers<[1], [0], [0], [1], [0, 0, 1, 1], [], []>} : vector<32x128xf32>, vector<128x128xf32>, vector<32x128xf32> -> vector<32x128xf32>
    %58 = arith.addf %54, %57 : vector<32x128xf32>
    %c2_53 = arith.constant 2 : index
    %c0_54 = arith.constant 0 : index
    %c0_55 = arith.constant 0 : index
    %59 = vector.load %arg5[%c2_53, %c0_54, %c0_55] : memref<3x1x128xf32, #tpu.memory_space<vmem>>, vector<1x1x128xf32>
    %60 = vector.shape_cast %59 : vector<1x1x128xf32> to vector<1x128xf32>
    %61 = vector.broadcast %60 : vector<1x128xf32> to vector<32x128xf32>
    %62 = arith.addf %58, %61 : vector<32x128xf32>
    %cst_56 = arith.constant 0.000000e+00 : f32
    %63 = vector.broadcast %cst_56 : f32 to vector<32x128xf32>
    %64 = arith.maximumf %62, %63 : vector<32x128xf32>
    %c2_57 = arith.constant 2 : index
    %c0_58 = arith.constant 0 : index
    %c0_59 = arith.constant 0 : index
    %65 = vector.load %arg6[%c2_57, %c0_58, %c0_59] : memref<3x128x128xf32, #tpu.memory_space<vmem>>, vector<1x128x128xf32>
    %66 = vector.shape_cast %65 : vector<1x128x128xf32> to vector<128x128xf32>
    %cst_60 = arith.constant dense<0.000000e+00> : vector<32x128xf32>
    %67 = tpu.matmul %64, %66, %cst_60 {dimension_numbers = #tpu.dot_dimension_numbers<[1], [0], [0], [1], [0, 0, 1, 1], [], []>} : vector<32x128xf32>, vector<128x128xf32>, vector<32x128xf32> -> vector<32x128xf32>
    %c2_61 = arith.constant 2 : index
    %c0_62 = arith.constant 0 : index
    %c0_63 = arith.constant 0 : index
    %68 = vector.load %arg7[%c2_61, %c0_62, %c0_63] : memref<3x1x128xf32, #tpu.memory_space<vmem>>, vector<1x1x128xf32>
    %69 = vector.shape_cast %68 : vector<1x1x128xf32> to vector<1x128xf32>
    %70 = vector.broadcast %69 : vector<1x128xf32> to vector<32x128xf32>
    %71 = arith.addf %67, %70 : vector<32x128xf32>
    %c0_64 = arith.constant 0 : index
    %c0_65 = arith.constant 0 : index
    %72 = vector.load %arg8[%c0_64, %c0_65] : memref<32x128xf32, #tpu.memory_space<vmem>>, vector<32x128xf32>
    tpu.vector_store %arg8[%c0_64, %c0_65], %71 {strides = array<i32>} : memref<32x128xf32, #tpu.memory_space<vmem>>, vector<32x128xf32>,
    return
  }
}

</mosaic_0001>

<bundles_post_ra>
// kernel: tpu_custom_call.1
= control target key start
LH: loop header
LB: loop body
LE: loop exit
PB: predicated region body
PF: predicated region fallthrough
CT: control target
= control target key end

     0   :  { %13 = vsyncpa [#allocation3], 0  ;;  %s2755_s0 = inlined_call_operand.vmem [shape: f32[32,128], index: 0, kind: input, shape index: {}]   ;;  %s2756_s1 = inlined_call_operand.vmem [shape: f32[32,1], index: 1, kind: input, shape index: {}]   ;;  %s2757_s2 = inlined_call_operand.hbm [shape: f32[32,32], index: 2, kind: input, shape index: {}]   ;;  %s2758_s3 = inlined_call_operand.hbm [shape: f32[3,128,128], index: 3, kind: input, shape index: {}]   ;;  %s2759_s4 = inlined_call_operand.hbm [shape: f32[3,128,128], index: 4, kind: input, shape index: {}]   ;;  %s2760_s5 = inlined_call_operand.vmem [shape: f32[3,1,128], index: 5, kind: input, shape index: {}]   ;;  %s2761_s6 = inlined_call_operand.hbm [shape: f32[3,128,128], index: 6, kind: input, shape index: {}]   ;;  %s2762_s7 = inlined_call_operand.vmem [shape: f32[3,1,128], index: 7, kind: input, shape index: {}]   ;;  %s2763_s8 = inlined_call_operand.hbm [shape: f32[32,128], index: 8, kind: output, shape index: {}]  }
   0x1   :  { %14 = vsyncpa [#allocation6], 0 }
   0x2   :  { %15 = vsyncpa [#allocation9], 0 }
   0x3   :  { %16 = vsyncpa [#allocation4], 0  ;;  %s2467_s27 = smov [#allocation5]   ;;  %s2468_s29 = smov [#allocation2]  }
   0x4   :  { %s38_s28 = sshll.u32 %s2467_s27, 4  ;;  %s26_s30 = sshll.u32 %s2468_s29, 4  ;;  %s39_s28 = int_to_ptr.vmem [resolvable:$true] %s38_s28  ;;  %s2520_s30 = int_to_ptr.vmem [resolvable:$true] %s26_s30 }
   0x5   :  { %s2349_s11 = scalar_lea.hbm %s2758_s3, 6144 }
   0x6   :  { %p2350_p0 = scmp.ne.s32.totalorder %s2758_s3, %s2349_s11  ;;  %p2353_p1 = scmp.lt.u32.totalorder %s2349_s11, %s2758_s3 }
   0x8   :  { %p2355_p2 = pnand %p2353_p1, %p2350_p0 }
   0xa   :  { %2358 = shalt.err (!%p2355_p2)
}
   0xb   :  { %s2359_s16 = scalar_lea.vmem %s39_s28, 6144  ;;  %p2364_p4 = scmp.lt.s32.totalorder %s39_s28, %s39_s28 }
   0xc   :  { %p2360_p3 = scmp.ne.s32.totalorder %s39_s28, %s2359_s16  ;;  %p2365_p5 = scmp.lt.s32.totalorder %s2359_s16, %s2359_s16 }
   0xe   :  { %p2366_p6 = por %p2365_p5, %p2364_p4 }
  0x10   :  { %p2367_p7 = pnand %p2366_p6, %p2360_p3 }
  0x12   :  { %2370 = shalt.err (!%p2367_p7)
}
  0x13   :  { %s2469_s17 = smov 128   ;;  %s2470_s18 = smov 8  }
  0x14   :  { %44 = dma.hbm_to_vmem [thread:$0]  %s2758_s3, 6144, %s39_s28, [#allocation6], %s2469_s17, %s2469_s17, %s2470_s18  }
  0x15   :  { %s2371_s23 = scalar_lea.hbm %s2757_s2, 512 }
  0x16   :  { %p2372_p8 = scmp.ne.s32.totalorder %s2757_s2, %s2371_s23  ;;  %p2375_p9 = scmp.lt.u32.totalorder %s2371_s23, %s2757_s2 }
  0x18   :  { %p2377_p10 = pnand %p2375_p9, %p2372_p8 }
  0x1a   :  { %2380 = shalt.err (!%p2377_p10)
}
  0x1b   :  { %s2381_s29 = scalar_lea.vmem %s2520_s30, 512  ;;  %p2386_p12 = scmp.lt.s32.totalorder %s2520_s30, %s2520_s30 }
  0x1c   :  { %p2382_p11 = scmp.ne.s32.totalorder %s2520_s30, %s2381_s29  ;;  %p2387_p13 = scmp.lt.s32.totalorder %s2381_s29, %s2381_s29 }
  0x1e   :  { %p2388_p0 = por %p2387_p13, %p2386_p12 }
  0x20   :  { %p2389_p1 = pnand %p2388_p0, %p2382_p11 }
  0x22   :  { %2392 = shalt.err (!%p2389_p1)
}
  0x23   :  { %32 = dma.hbm_to_vmem [thread:$0]  %s2757_s2, 512, %s2520_s30, [#allocation3], %s2469_s17, %s2469_s17, %s2470_s18  }
  0x24   :  { %s2471_s9 = smov [#allocation7]   ;;  %s2472_s11 = smov [#allocation8]  }
  0x25   :  { %s50_s10 = sshll.u32 %s2471_s9, 4  ;;  %s64_s12 = sshll.u32 %s2472_s11, 4  ;;  %s51_s10 = int_to_ptr.vmem [resolvable:$true] %s50_s10  ;;  %s2557_s12 = int_to_ptr.vmem [resolvable:$true] %s64_s12 }
  0x26   :  { %s2393_s15 = scalar_lea.hbm %s2759_s4, 6144 }
  0x27   :  { %p2394_p2 = scmp.ne.s32.totalorder %s2759_s4, %s2393_s15  ;;  %p2397_p3 = scmp.lt.u32.totalorder %s2393_s15, %s2759_s4 }
  0x29   :  { %p2399_p4 = pnand %p2397_p3, %p2394_p2 }
  0x2b   :  { %2402 = shalt.err (!%p2399_p4)
}
  0x2c   :  { %s2403_s2 = scalar_lea.vmem %s51_s10, 6144  ;;  %p2408_p6 = scmp.lt.s32.totalorder %s51_s10, %s51_s10 }
  0x2d   :  { %p2404_p5 = scmp.ne.s32.totalorder %s51_s10, %s2403_s2  ;;  %p2409_p7 = scmp.lt.s32.totalorder %s2403_s2, %s2403_s2 }
  0x2f   :  { %p2410_p8 = por %p2409_p7, %p2408_p6 }
  0x31   :  { %p2411_p9 = pnand %p2410_p8, %p2404_p5 }
  0x33   :  { %2414 = shalt.err (!%p2411_p9)
}
  0x34   :  { %56 = dma.hbm_to_vmem [thread:$0]  %s2759_s4, 6144, %s51_s10, [#allocation6], %s2469_s17, %s2469_s17, %s2470_s18  }
  0x35   :  { %s2415_s25 = scalar_lea.hbm %s2761_s6, 6144 }
  0x36   :  { %p2416_p10 = scmp.ne.s32.totalorder %s2761_s6, %s2415_s25  ;;  %p2419_p11 = scmp.lt.u32.totalorder %s2415_s25, %s2761_s6 }
  0x38   :  { %p2421_p12 = pnand %p2419_p11, %p2416_p10 }
  0x3a   :  { %2424 = shalt.err (!%p2421_p12)
}
  0x3b   :  { %s2425_s28 = scalar_lea.vmem %s2557_s12, 6144  ;;  %p2430_p0 = scmp.lt.s32.totalorder %s2557_s12, %s2557_s12 }
  0x3c   :  { %p2426_p13 = scmp.ne.s32.totalorder %s2557_s12, %s2425_s28  ;;  %p2431_p1 = scmp.lt.s32.totalorder %s2425_s28, %s2425_s28 }
  0x3e   :  { %p2432_p2 = por %p2431_p1, %p2430_p0 }
  0x40   :  { %p2433_p3 = pnand %p2432_p2, %p2426_p13 }
  0x42   :  { %2436 = shalt.err (!%p2433_p3)
}
  0x43   :  { %70 = dma.hbm_to_vmem [thread:$0]  %s2761_s6, 6144, %s2557_s12, [#allocation9], %s2469_s17, %s2469_s17, %s2470_s18  }
  0x44   :  { %2459 = dma.done.wait [#allocation3], 512  }
  0x45   :  { %2460 = vsyncadd [#allocation3], 4294966784 }
  0x46   :  { %2461 = dma.done.wait [#allocation6], 12288  }
  0x47   :  { %2462 = vsyncadd [#allocation6], 4294955008 }
  0x48   :  { %2463 = dma.done.wait [#allocation9], 6144  }
  0x49   :  { %2464 = vsyncadd [#allocation9], 4294961152  ;;  %v2473_v0 = vmov 0   ;;  %v91_v1 = vld [vmem:[%s2756_s1 + $0x10] sm:$0xff]  ;;  %v89_v2 = vld [vmem:[%s2756_s1] sm:$0xff]  ;;  %vm121_vm0 = vcmask 261120  }
  0x4a   :  { %2348 = vset.pattern.permute.xlu1 %v2473_v0  ;;  %2347 = vset.pattern.permute.xlu0 %v2473_v0  ;;  %v92_v3 = vld [vmem:[%s2756_s1 + $0x18] sm:$0xff]  ;;  %v90_v4 = vld [vmem:[%s2756_s1 + $0x8] sm:$0xff]  ;;  %v2606_v5 = vld [vmem:[#allocation2] sm:$0xff] }
  0x4b   :  { %105 = vperm.xlu1 %2348, %v91_v1   ;;  %95 = vperm.xlu0 %2347, %v89_v2   ;;  %v235_v6 = vld [vmem:[#allocation7] sm:$0xff]  ;;  %v236_v7 = vld [vmem:[#allocation7 + $0x8] sm:$0xff]  ;;  %v237_v8 = vld [vmem:[#allocation7 + $0x10] sm:$0xff] }
  0x4c   :  { %1639 = vmatprep.mubr.msk.f32.mxu0 %vm121_vm0, %v2606_v5  ;;  %v2023_v9 = vpack.c.bf16 %v236_v7, %v235_v6  ;;  %v238_v10 = vld [vmem:[#allocation7 + $0x18] sm:$0xff]  ;;  %v239_v12 = vld [vmem:[#allocation7 + $0x20] sm:$0xff]  ;;  %v240_v13 = vld [vmem:[#allocation7 + $0x28] sm:$0xff] }
  0x4d   :  { %v2027_v11 = vpack.c.bf16 %v238_v10, %v237_v8  ;;  %v2031_v14 = vpack.c.bf16 %v240_v13, %v239_v12  ;;  %v241_v15 = vld [vmem:[#allocation7 + $0x30] sm:$0xff]  ;;  %v242_v16 = vld [vmem:[#allocation7 + $0x38] sm:$0xff]  ;;  %v243_v18 = vld [vmem:[#allocation7 + $0x40] sm:$0xff] }
  0x4e   :  { %2024 = vmatprep.subr.bf16.mxu1 %v2023_v9  ;;  %v2035_v17 = vpack.c.bf16 %v242_v16, %v241_v15  ;;  %v244_v19 = vld [vmem:[#allocation7 + $0x48] sm:$0xff]  ;;  %v245_v21 = vld [vmem:[#allocation7 + $0x50] sm:$0xff]  ;;  %v246_v22 = vld [vmem:[#allocation7 + $0x58] sm:$0xff] }
  0x4f   :  { %110 = vperm.xlu1 %2348, %v92_v3   ;;  %100 = vperm.xlu0 %2347, %v90_v4   ;;  %v2039_v20 = vpack.c.bf16 %v244_v19, %v243_v18  ;;  %v2043_v23 = vpack.c.bf16 %v246_v22, %v245_v21  ;;  %v247_v24 = vld [vmem:[#allocation7 + $0x60] sm:$0xff]  ;;  %v248_v25 = vld [vmem:[#allocation7 + $0x68] sm:$0xff]  ;;  %v249_v27 = vld [vmem:[#allocation7 + $0x70] sm:$0xff] }
  0x50   :  { %2026 = vmatpush3.bf16.msra.mxu1 %v2023_v9  ;;  %v2047_v26 = vpack.c.bf16 %v248_v25, %v247_v24  ;;  %v250_v28 = vld [vmem:[#allocation7 + $0x78] sm:$0xff]  ;;  %v87_v32 = vld [vmem:[%s2755_s0 + $0x10] sm:$0xff]  ;;  %v85_v33 = vld [vmem:[%s2755_s0] sm:$0xff] }
  0x51   :  { %2028 = vmatprep.subr.bf16.mxu1 %v2027_v11  ;;  %v2051_v29 = vpack.c.bf16 %v250_v28, %v249_v27  ;;  %v88_v34 = vld [vmem:[%s2755_s0 + $0x18] sm:$0xff]  ;;  %v86_v35 = vld [vmem:[%s2755_s0 + $0x8] sm:$0xff]  ;;  %v2636_v45 = vld [vmem:[#allocation2 + $0x10] sm:$0xff] }
  0x52   :  { %v2634_v44 = vld [vmem:[#allocation2 + $0x8] sm:$0xff]  ;;  %v2642_v46 = vld [vmem:[#allocation2 + $0x18] sm:$0xff]  ;;  %v219_v47 = vld [vmem:[#allocation5] sm:$0xff] }
  0x53   :  { %v220_v48 = vld [vmem:[#allocation5 + $0x8] sm:$0xff]  ;;  %v436_v50 = vld [vmem:[#allocation8] sm:$0xff]  ;;  %v438_v52 = vld [vmem:[#allocation8 + $0x10] sm:$0xff] }
  0x54   :  { %2030 = vmatpush3.bf16.msra.mxu1 %v2027_v11  ;;  %v2055_v49 = vpack.c.bf16 %v220_v48, %v219_v47  ;;  %v437_v51 = vld [vmem:[#allocation8 + $0x8] sm:$0xff]  ;;  %v439_v54 = vld [vmem:[#allocation8 + $0x18] sm:$0xff]  ;;  %v440_v56 = vld [vmem:[#allocation8 + $0x20] sm:$0xff] }
  0x55   :  { %2032 = vmatprep.subr.bf16.mxu1 %v2031_v14  ;;  %v2087_v53 = vpack.c.bf16 %v437_v51, %v436_v50  ;;  %v2091_v55 = vpack.c.bf16 %v439_v54, %v438_v52  ;;  %v441_v57 = vld [vmem:[#allocation8 + $0x28] sm:$0xff]  ;;  %v442_v59 = vld [vmem:[#allocation8 + $0x30] sm:$0xff]  ;;  %v443_v60 = vld [vmem:[#allocation8 + $0x38] sm:$0xff] }
  0x56   :  { %v2095_v58 = vpack.c.bf16 %v441_v57, %v440_v56  ;;  %v2099_v61 = vpack.c.bf16 %v443_v60, %v442_v59  ;;  %v444_v62 = vld [vmem:[#allocation8 + $0x40] sm:$0xff]  ;;  %v445_v63 = vld [vmem:[#allocation8 + $0x48] sm:$0xff]  ;;  %v446_v1 = vld [vmem:[#allocation8 + $0x50] sm:$0xff] }
  0x57   :  { %v2103_v0 = vpack.c.bf16 %v445_v63, %v444_v62  ;;  %v447_v2 = vld [vmem:[#allocation8 + $0x58] sm:$0xff]  ;;  %v448_v4 = vld [vmem:[#allocation8 + $0x60] sm:$0xff]  ;;  %v449_v6 = vld [vmem:[#allocation8 + $0x68] sm:$0xff] }
  0x58   :  { %2034 = vmatpush3.bf16.msra.mxu1 %v2031_v14  ;;  %v2107_v3 = vpack.c.bf16 %v447_v2, %v446_v1  ;;  %v2111_v7 = vpack.c.bf16 %v449_v6, %v448_v4  ;;  %v221_v8 = vld [vmem:[#allocation5 + $0x10] sm:$0xff]  ;;  %v222_v9 = vld [vmem:[#allocation5 + $0x18] sm:$0xff]  ;;  %v223_v13 = vld [vmem:[#allocation5 + $0x20] sm:$0xff] }
  0x59   :  { %2036 = vmatprep.subr.bf16.mxu1 %v2035_v17  ;;  %v2059_v12 = vpack.c.bf16 %v222_v9, %v221_v8  ;;  %v224_v14 = vld [vmem:[#allocation5 + $0x28] sm:$0xff]  ;;  %v225_v18 = vld [vmem:[#allocation5 + $0x30] sm:$0xff]  ;;  %v226_v19 = vld [vmem:[#allocation5 + $0x38] sm:$0xff] }
  0x5a   :  { %v227_v21 = vld [vmem:[#allocation5 + $0x40] sm:$0xff]  ;;  %v228_v22 = vld [vmem:[#allocation5 + $0x48] sm:$0xff]  ;;  %v229_v24 = vld [vmem:[#allocation5 + $0x50] sm:$0xff] }
  0x5b   :  { %v230_v25 = vld [vmem:[#allocation5 + $0x58] sm:$0xff]  ;;  %v231_v27 = vld [vmem:[#allocation5 + $0x60] sm:$0xff]  ;;  %v232_v28 = vld [vmem:[#allocation5 + $0x68] sm:$0xff] }
  0x5c   :  { %2038 = vmatpush3.bf16.msra.mxu1 %v2035_v17  ;;  %v2063_v17 = vpack.c.bf16 %v224_v14, %v223_v13  ;;  %v1410_v52 = vld [vmem:[%s2762_s7] ss:$0 sm:$0xff]  ;;  %v652_v2 = vld [vmem:[#allocation7 + $0x88] sm:$0xff]  ;;  %v654_v8 = vld [vmem:[#allocation7 + $0x98] sm:$0xff] }
  0x5d   :  { %2040 = vmatprep.subr.bf16.mxu1 %v2039_v20  ;;  %v651_v1 = vld [vmem:[#allocation7 + $0x80] sm:$0xff]  ;;  %v657_v13 = vld [vmem:[#allocation7 + $0xb0] sm:$0xff]  ;;  %v658_v14 = vld [vmem:[#allocation7 + $0xb8] sm:$0xff] }
  0x5e   :  { %v2127_v6 = vpack.c.bf16 %v652_v2, %v651_v1 }
  0x60   :  { %2042 = vmatpush3.bf16.msra.mxu1 %v2039_v20  ;;  %v2067_v20 = vpack.c.bf16 %v226_v19, %v225_v18  ;;  %v661_v19 = vld [vmem:[#allocation7 + $0xd0] sm:$0xff] }
  0x61   :  { %2044 = vmatprep.subr.bf16.mxu1 %v2043_v23 }
  0x64   :  { %2046 = vmatpush3.bf16.msra.mxu1 %v2043_v23  ;;  %v2071_v23 = vpack.c.bf16 %v228_v22, %v227_v21  ;;  %v663_v22 = vld [vmem:[#allocation7 + $0xe0] sm:$0xff] }
  0x65   :  { %2048 = vmatprep.subr.bf16.mxu1 %v2047_v26 }
  0x68   :  { %2050 = vmatpush3.bf16.msra.mxu1 %v2047_v26  ;;  %v2075_v26 = vpack.c.bf16 %v230_v25, %v229_v24  ;;  %v665_v25 = vld [vmem:[#allocation7 + $0xf0] sm:$0xff] }
  0x69   :  { %2052 = vmatprep.subr.bf16.mxu1 %v2051_v29 }
  0x6c   :  { %2054 = vmatpush3.bf16.msra.mxu1 %v2051_v29  ;;  %v2079_v29 = vpack.c.bf16 %v232_v28, %v231_v27  ;;  %v634_v28 = vld [vmem:[#allocation5 + $0x80] sm:$0xff] }
  0x6d   :  { %2056 = vmatprep.subr.bf16.mxu1 %v2055_v49 }
  0xca   :  { %v106_v30 = vpop.permute.xlu1 %105  ;;  %v96_v31 = vpop.permute.xlu0 %95 }
  0xcb   :  { %v2622_v38 = vmul.f32 %v106_v30, %v87_v32  ;;  %v2624_v39 = vmul.f32 %v96_v31, %v85_v33  ;;  %v233_v30 = vld [vmem:[#allocation5 + $0x70] sm:$0xff]  ;;  %v234_v31 = vld [vmem:[#allocation5 + $0x78] sm:$0xff] }
  0xcc   :  { %v2083_v32 = vpack.c.bf16 %v234_v31, %v233_v30  ;;  %v450_v33 = vld [vmem:[#allocation8 + $0x70] sm:$0xff]  ;;  %v854_v31 = vld [vmem:[#allocation8 + $0x80] sm:$0xff] }
  0xce   :  { %v111_v36 = vpop.permute.xlu1 %110  ;;  %v101_v37 = vpop.permute.xlu0 %100 }
  0xcf   :  { %v2626_v40 = vmul.f32 %v111_v36, %v88_v34  ;;  %v2628_v41 = vmul.f32 %v101_v37, %v86_v35  ;;  %v451_v34 = vld [vmem:[#allocation8 + $0x78] sm:$0xff]  ;;  %v1409_v36 = vld [vmem:[%s2760_s5] ss:$0 sm:$0xff] }
  0xd0   :  { %v2115_v35 = vpack.c.bf16 %v451_v34, %v450_v33  ;;  %v856_v33 = vld [vmem:[#allocation8 + $0x90] sm:$0xff] }
  0xd1   :  { %v2015_v42 = vpack.c.bf16 %v2628_v41, %v2624_v39  ;;  %v2019_v43 = vpack.c.bf16 %v2626_v40, %v2622_v38 }
  0xd3   :  { %2016 = vmatprep.subr.bf16.mxu0 %v2015_v42 }
  0xd4   :  { %2018 = vmatpush3.bf16.msra.mxu0 %v2015_v42 }
  0xd5   :  { %2020 = vmatprep.subr.bf16.mxu0 %v2019_v43 }
  0xd8   :  { %2022 = vmatpush3.bf16.msra.mxu0 %v2019_v43 }
  0xd9   :  { %2088 = vmatprep.subr.bf16.mxu0 %v2087_v53 }
  0xdb   :  { %1640 = vmatmul.mubr.msk.f32.vlgmr.msra.gmra.mrb[0].mxu0 %vm121_vm0, %v2634_v44 }
  0xdc   :  { %1642 = vmatprep.mubr.msk.f32.mxu0 %vm121_vm0, %v2636_v45  ;;  %2090 = vmatpush3.bf16.msra.mxu0 %v2087_v53 }
  0xdd   :  { %2092 = vmatprep.subr.bf16.mxu0 %v2091_v55 }
  0xdf   :  { %1643 = vmatmul.mubr.msk.f32.gmra.mrb[2].mxu0 %vm121_vm0, %v2642_v46 }
  0xe0   :  { %2094 = vmatpush3.bf16.msra.mxu0 %v2091_v55 }
  0xe1   :  { %2096 = vmatprep.subr.bf16.mxu0 %v2095_v58 }
  0xe4   :  { %2098 = vmatpush3.bf16.msra.mxu0 %v2095_v58 }
  0xe5   :  { %2100 = vmatprep.subr.bf16.mxu0 %v2099_v61 }
  0xe8   :  { %2102 = vmatpush3.bf16.msra.mxu0 %v2099_v61 }
  0xe9   :  { %2104 = vmatprep.subr.bf16.mxu0 %v2103_v0 }
  0xec   :  { %2106 = vmatpush3.bf16.msra.mxu0 %v2103_v0 }
  0xed   :  { %2108 = vmatprep.subr.bf16.mxu0 %v2107_v3 }
  0xf0   :  { %2110 = vmatpush3.bf16.msra.mxu0 %v2107_v3 }
  0xf1   :  { %2112 = vmatprep.subr.bf16.mxu0 %v2111_v7 }
  0xf4   :  { %2114 = vmatpush3.bf16.msra.mxu0 %v2111_v7  ;;  %v653_v7 = vld [vmem:[#allocation7 + $0x90] sm:$0xff] }
  0xf5   :  { %2116 = vmatprep.subr.bf16.mxu0 %v2115_v35  ;;  %v2131_v9 = vpack.c.bf16 %v654_v8, %v653_v7 }
  0xf8   :  { %2118 = vmatpush3.bf16.msra.mxu0 %v2115_v35  ;;  %v857_v35 = vld [vmem:[#allocation8 + $0x98] sm:$0xff] }
 0x1ae   :  { %v1641_v10 = vpop.f32.mrb[0].mxu0 }
 0x1af   :  { %v200_v11 = vpop.f32.mrb[1].mxu0 }
 0x1b0   :  { %1677 = vmatprep.mubr.f32.mxu1 %v200_v11  ;;  %v656_v11 = vld [vmem:[#allocation7 + $0xa8] sm:$0xff] }
 0x1b1   :  { %1678 = vmatmul.mubr.f32.vlgmr.msra.gmra.mrb[0].mxu1 %v1641_v10  ;;  %v655_v10 = vld [vmem:[#allocation7 + $0xa0] sm:$0xff] }
 0x1b2   :  { %2058 = vmatpush3.bf16.msra.mxu1 %v2055_v49  ;;  %v1644_v15 = vpop.f32.mrb[2].mxu0 }
 0x1b3   :  { %v210_v16 = vpop.f32.mrb[3].mxu0  ;;  %2060 = vmatprep.subr.bf16.mxu1 %v2059_v12 }
 0x1b4   :  { %1680 = vmatprep.mubr.f32.mxu1 %v210_v16  ;;  %v659_v16 = vld [vmem:[#allocation7 + $0xc0] sm:$0xff] }
 0x1b5   :  { %1681 = vmatmul.mubr.f32.gmra.mrb[2].mxu1 %v1644_v15  ;;  %v2139_v15 = vpack.c.bf16 %v658_v14, %v657_v13  ;;  %v642_v13 = vld [vmem:[#allocation5 + $0xc0] sm:$0xff]  ;;  %v643_v14 = vld [vmem:[#allocation5 + $0xc8] sm:$0xff] }
 0x1b6   :  { %2062 = vmatpush3.bf16.msra.mxu1 %v2059_v12  ;;  %1715 = vmatprep.mubr.f32.mxu1 %v2624_v39  ;;  %v2135_v12 = vpack.c.bf16 %v656_v11, %v655_v10  ;;  %v640_v10 = vld [vmem:[#allocation5 + $0xb0] sm:$0xff]  ;;  %v641_v11 = vld [vmem:[#allocation5 + $0xb8] sm:$0xff] }
 0x1b7   :  { %2064 = vmatprep.subr.bf16.mxu1 %v2063_v17 }
 0x1ba   :  { %2066 = vmatpush3.bf16.msra.mxu1 %v2063_v17  ;;  %v660_v17 = vld [vmem:[#allocation7 + $0xc8] sm:$0xff] }
 0x1bb   :  { %2068 = vmatprep.subr.bf16.mxu1 %v2067_v20  ;;  %v2143_v18 = vpack.c.bf16 %v660_v17, %v659_v16  ;;  %v644_v16 = vld [vmem:[#allocation5 + $0xd0] sm:$0xff]  ;;  %v645_v17 = vld [vmem:[#allocation5 + $0xd8] sm:$0xff] }
 0x1be   :  { %2070 = vmatpush3.bf16.msra.mxu1 %v2067_v20  ;;  %v662_v20 = vld [vmem:[#allocation7 + $0xd8] sm:$0xff] }
 0x1bf   :  { %2072 = vmatprep.subr.bf16.mxu1 %v2071_v23  ;;  %v2147_v21 = vpack.c.bf16 %v662_v20, %v661_v19  ;;  %v646_v19 = vld [vmem:[#allocation5 + $0xe0] sm:$0xff]  ;;  %v647_v20 = vld [vmem:[#allocation5 + $0xe8] sm:$0xff] }
 0x1c2   :  { %2074 = vmatpush3.bf16.msra.mxu1 %v2071_v23  ;;  %v664_v23 = vld [vmem:[#allocation7 + $0xe8] sm:$0xff] }
 0x1c3   :  { %2076 = vmatprep.subr.bf16.mxu1 %v2075_v26  ;;  %v2151_v24 = vpack.c.bf16 %v664_v23, %v663_v22  ;;  %v648_v22 = vld [vmem:[#allocation5 + $0xf0] sm:$0xff] }
 0x1c4   :  { %v868_v23 = vld [vmem:[#allocation8 + $0xf0] sm:$0xff] }
 0x1c6   :  { %2078 = vmatpush3.bf16.msra.mxu1 %v2075_v26  ;;  %v666_v26 = vld [vmem:[#allocation7 + $0xf8] sm:$0xff] }
 0x1c7   :  { %2080 = vmatprep.subr.bf16.mxu1 %v2079_v29  ;;  %v2155_v27 = vpack.c.bf16 %v666_v26, %v665_v25  ;;  %v1416_v26 = vld [vmem:[%s2760_s5 + $0x1] ss:$0 sm:$0xff] }
 0x1ca   :  { %2082 = vmatpush3.bf16.msra.mxu1 %v2079_v29  ;;  %v635_v29 = vld [vmem:[#allocation5 + $0x88] sm:$0xff] }
 0x1cb   :  { %2084 = vmatprep.subr.bf16.mxu1 %v2083_v32  ;;  %v2159_v30 = vpack.c.bf16 %v635_v29, %v634_v28 }
 0x1ce   :  { %2086 = vmatpush3.bf16.msra.mxu1 %v2083_v32  ;;  %v855_v32 = vld [vmem:[#allocation8 + $0x88] sm:$0xff] }
 0x1cf   :  { %v2191_v34 = vpack.c.bf16 %v855_v32, %v854_v31  ;;  %v1070_v32 = vld [vmem:[#allocation7 + $0x100] sm:$0xff] }
 0x1d1   :  { %1716 = vmatmul.mubr.f32.vlgmr.msra.gmra.mrb[0].mxu1 %v2628_v41  ;;  %2192 = vmatprep.subr.bf16.mxu1 %v2191_v34 }
 0x1d2   :  { %1718 = vmatprep.mubr.f32.mxu1 %v2622_v38  ;;  %2194 = vmatpush3.bf16.msra.mxu1 %v2191_v34  ;;  %v1072_v34 = vld [vmem:[#allocation7 + $0x110] sm:$0xff] }
 0x1d5   :  { %1719 = vmatmul.mubr.f32.gmra.mrb[2].mxu1 %v2626_v40 }
 0x2a4   :  { %v1717_v37 = vpop.f32.mrb[0].mxu1 }
 0x2a5   :  { %v429_v39 = vadd.f32 %v1717_v37, %v1409_v36  ;;  %v402_v42 = vpop.f32.mrb[1].mxu1  ;;  %v858_v37 = vld [vmem:[#allocation8 + $0xa0] sm:$0xff] }
 0x2a6   :  { %v428_v43 = vadd.f32 %v1409_v36, %v402_v42 }
 0x2a7   :  { %v433_v41 = vmax.f32 %v429_v39, 0.0  ;;  %v859_v39 = vld [vmem:[#allocation8 + $0xa8] sm:$0xff] }
 0x2a8   :  { %v432_v47 = vmax.f32 %v428_v43, 0.0  ;;  %v1720_v48 = vpop.f32.mrb[2].mxu1  ;;  %v2199_v42 = vpack.c.bf16 %v859_v39, %v858_v37  ;;  %v860_v43 = vld [vmem:[#allocation8 + $0xb0] sm:$0xff]  ;;  %v1074_v39 = vld [vmem:[#allocation7 + $0x120] sm:$0xff] }
 0x2a9   :  { %v431_v49 = vadd.f32 %v1720_v48, %v1409_v36  ;;  %v412_v38 = vpop.f32.mrb[3].mxu1 }
 0x2aa   :  { %v430_v50 = vadd.f32 %v1409_v36, %v412_v38  ;;  %1753 = vmatprep.mubr.f32.mxu0 %v432_v47  ;;  %v2195_v36 = vpack.c.bf16 %v857_v35, %v856_v33  ;;  %v861_v47 = vld [vmem:[#allocation8 + $0xb8] sm:$0xff]  ;;  %v1071_v33 = vld [vmem:[#allocation7 + $0x108] sm:$0xff] }
 0x2ab   :  { %1754 = vmatmul.mubr.f32.vlgmr.msra.gmra.mrb[4].mxu0 %v433_v41  ;;  %v435_v51 = vmax.f32 %v431_v49, 0.0  ;;  %v2203_v48 = vpack.c.bf16 %v861_v47, %v860_v43  ;;  %v862_v41 = vld [vmem:[#allocation8 + $0xc0] sm:$0xff]  ;;  %v863_v49 = vld [vmem:[#allocation8 + $0xc8] sm:$0xff]  ;;  %v2231_v35 = vpack.c.bf16 %v1071_v33, %v1070_v32  ;;  %v1076_v47 = vld [vmem:[#allocation7 + $0x130] sm:$0xff] }
 0x2ac   :  { %v434_v40 = vmax.f32 %v430_v50, 0.0  ;;  %2196 = vmatprep.subr.bf16.mxu1 %v2195_v36  ;;  %v2207_v38 = vpack.c.bf16 %v863_v49, %v862_v41  ;;  %v864_v50 = vld [vmem:[#allocation8 + $0xd0] sm:$0xff]  ;;  %v1078_v49 = vld [vmem:[#allocation7 + $0x140] sm:$0xff]  ;;  %v1056_v32 = vld [vmem:[#allocation5 + $0x118] sm:$0xff] }
 0x2ad   :  { %2198 = vmatpush3.bf16.msra.mxu1 %v2195_v36  ;;  %v1073_v36 = vld [vmem:[#allocation7 + $0x118] sm:$0xff] }
 0x2ae   :  { %1756 = vmatprep.mubr.f32.mxu0 %v434_v40  ;;  %2200 = vmatprep.subr.bf16.mxu1 %v2199_v42  ;;  %v865_v40 = vld [vmem:[#allocation8 + $0xd8] sm:$0xff]  ;;  %v2235_v37 = vpack.c.bf16 %v1073_v36, %v1072_v34  ;;  %v1057_v36 = vld [vmem:[#allocation5 + $0x120] sm:$0xff] }
 0x2af   :  { %1757 = vmatmul.mubr.f32.gmra.mrb[6].mxu0 %v435_v51  ;;  %v2211_v51 = vpack.c.bf16 %v865_v40, %v864_v50  ;;  %v1080_v40 = vld [vmem:[#allocation7 + $0x150] sm:$0xff] }
 0x2b0   :  { %1767 = vmatprep.mubr.msk.f32.mxu0 %vm121_vm0, %v2606_v5 }
 0x2b1   :  { %2202 = vmatpush3.bf16.msra.mxu1 %v2199_v42  ;;  %v1075_v42 = vld [vmem:[#allocation7 + $0x128] sm:$0xff] }
 0x2b2   :  { %2204 = vmatprep.subr.bf16.mxu1 %v2203_v48  ;;  %v2239_v43 = vpack.c.bf16 %v1075_v42, %v1074_v39 }
 0x2b5   :  { %2206 = vmatpush3.bf16.msra.mxu1 %v2203_v48  ;;  %v1077_v48 = vld [vmem:[#allocation7 + $0x138] sm:$0xff] }
 0x2b6   :  { %2208 = vmatprep.subr.bf16.mxu1 %v2207_v38  ;;  %v2243_v41 = vpack.c.bf16 %v1077_v48, %v1076_v47  ;;  %v1059_v47 = vld [vmem:[#allocation5 + $0x130] sm:$0xff]  ;;  %v1060_v48 = vld [vmem:[#allocation5 + $0x138] sm:$0xff] }
 0x2b9   :  { %2210 = vmatpush3.bf16.msra.mxu1 %v2207_v38  ;;  %v1079_v38 = vld [vmem:[#allocation7 + $0x148] sm:$0xff] }
 0x2ba   :  { %2212 = vmatprep.subr.bf16.mxu1 %v2211_v51  ;;  %v2247_v50 = vpack.c.bf16 %v1079_v38, %v1078_v49  ;;  %v1061_v49 = vld [vmem:[#allocation5 + $0x140] sm:$0xff]  ;;  %v1062_v38 = vld [vmem:[#allocation5 + $0x148] sm:$0xff] }
 0x2bd   :  { %2214 = vmatpush3.bf16.msra.mxu1 %v2211_v51  ;;  %v1081_v51 = vld [vmem:[#allocation7 + $0x158] sm:$0xff] }
 0x37e   :  { %v1755_v53 = vpop.f32.mrb[4].mxu0 }
 0x37f   :  { %v2658_v54 = vadd.f32 %v1755_v53, %v1410_v52  ;;  %v525_v55 = vpop.f32.mrb[5].mxu0  ;;  %v867_v53 = vld [vmem:[#allocation8 + $0xe8] sm:$0xff] }
 0x380   :  { %v2660_v56 = vadd.f32 %v1410_v52, %v525_v55 }
 0x381   :  { %v545_v57 = vmax.f32 %v2658_v54, 0.0 }
 0x382   :  { %v544_v58 = vmax.f32 %v2660_v56, 0.0  ;;  %v1758_v59 = vpop.f32.mrb[6].mxu0  ;;  %v649_v56 = vld [vmem:[#allocation5 + $0xf8] sm:$0xff] }
 0x383   :  { %v2664_v60 = vadd.f32 %v1758_v59, %v1410_v52  ;;  %v535_v61 = vpop.f32.mrb[7].mxu0  ;;  %v636_v59 = vld [vmem:[#allocation5 + $0x90] sm:$0xff] }
 0x384   :  { %v2119_v62 = vpack.c.bf16 %v545_v57, %v544_v58  ;;  %v2670_v63 = vadd.f32 %v1410_v52, %v535_v61  ;;  %v866_v52 = vld [vmem:[#allocation8 + $0xe0] sm:$0xff]  ;;  %v637_v61 = vld [vmem:[#allocation5 + $0x98] sm:$0xff] }
 0x385   :  { %v547_v0 = vmax.f32 %v2664_v60, 0.0  ;;  %v2215_v55 = vpack.c.bf16 %v867_v53, %v866_v52  ;;  %v2163_v2 = vpack.c.bf16 %v637_v61, %v636_v59  ;;  %v2251_v52 = vpack.c.bf16 %v1081_v51, %v1080_v40  ;;  %v1082_v53 = vld [vmem:[#allocation7 + $0x160] sm:$0xff]  ;;  %v1084_v61 = vld [vmem:[#allocation7 + $0x170] sm:$0xff]  ;;  %v1064_v51 = vld [vmem:[#allocation5 + $0x158] sm:$0xff] }
 0x386   :  { %v546_v3 = vmax.f32 %v2670_v63, 0.0  ;;  %2120 = vmatprep.subr.bf16.mxu0 %v2119_v62  ;;  %v1063_v40 = vld [vmem:[#allocation5 + $0x150] sm:$0xff] }
 0x387   :  { %2122 = vmatpush3.bf16.msra.mxu0 %v2119_v62  ;;  %2216 = vmatprep.subr.bf16.mxu1 %v2215_v55 }
 0x388   :  { %v2123_v4 = vpack.c.bf16 %v547_v0, %v546_v3  ;;  %2218 = vmatpush3.bf16.msra.mxu1 %v2215_v55  ;;  %v1083_v55 = vld [vmem:[#allocation7 + $0x168] sm:$0xff] }
 0x389   :  { %v2255_v59 = vpack.c.bf16 %v1083_v55, %v1082_v53  ;;  %v1065_v53 = vld [vmem:[#allocation5 + $0x160] sm:$0xff]  ;;  %v1066_v55 = vld [vmem:[#allocation5 + $0x168] sm:$0xff] }
 0x38a   :  { %2124 = vmatprep.subr.bf16.mxu0 %v2123_v4 }
 0x38b   :  { %2126 = vmatpush3.bf16.msra.mxu0 %v2123_v4  ;;  %v638_v4 = vld [vmem:[#allocation5 + $0xa0] sm:$0xff] }
 0x38c   :  { %2128 = vmatprep.subr.bf16.mxu0 %v2127_v6 }
 0x38e   :  { %1768 = vmatmul.mubr.msk.f32.vlgmr.msra.gmra.mrb[8].mxu0 %vm121_vm0, %v2634_v44 }
 0x38f   :  { %1770 = vmatprep.mubr.msk.f32.mxu0 %vm121_vm0, %v2636_v45  ;;  %2130 = vmatpush3.bf16.msra.mxu0 %v2127_v6  ;;  %v639_v6 = vld [vmem:[#allocation5 + $0xa8] sm:$0xff] }
 0x390   :  { %2132 = vmatprep.subr.bf16.mxu0 %v2131_v9 }
 0x392   :  { %1771 = vmatmul.mubr.msk.f32.gmra.mrb[10].mxu0 %vm121_vm0, %v2642_v46 }
 0x393   :  { %2134 = vmatpush3.bf16.msra.mxu0 %v2131_v9  ;;  %v2167_v9 = vpack.c.bf16 %v639_v6, %v638_v4 }
 0x394   :  { %2136 = vmatprep.subr.bf16.mxu0 %v2135_v12 }
 0x397   :  { %2138 = vmatpush3.bf16.msra.mxu0 %v2135_v12  ;;  %v2171_v12 = vpack.c.bf16 %v641_v11, %v640_v10 }
 0x398   :  { %2140 = vmatprep.subr.bf16.mxu0 %v2139_v15 }
 0x39b   :  { %2142 = vmatpush3.bf16.msra.mxu0 %v2139_v15  ;;  %v2175_v15 = vpack.c.bf16 %v643_v14, %v642_v13 }
 0x39c   :  { %2144 = vmatprep.subr.bf16.mxu0 %v2143_v18 }
 0x39f   :  { %2146 = vmatpush3.bf16.msra.mxu0 %v2143_v18  ;;  %v2179_v18 = vpack.c.bf16 %v645_v17, %v644_v16 }
 0x3a0   :  { %2148 = vmatprep.subr.bf16.mxu0 %v2147_v21 }
 0x3a3   :  { %2150 = vmatpush3.bf16.msra.mxu0 %v2147_v21  ;;  %v2183_v21 = vpack.c.bf16 %v647_v20, %v646_v19  ;;  %v1053_v19 = vld [vmem:[#allocation5 + $0x100] sm:$0xff]  ;;  %v1054_v20 = vld [vmem:[#allocation5 + $0x108] sm:$0xff] }
 0x3a4   :  { %2152 = vmatprep.subr.bf16.mxu0 %v2151_v24 }
 0x3a7   :  { %2154 = vmatpush3.bf16.msra.mxu0 %v2151_v24  ;;  %v869_v24 = vld [vmem:[#allocation8 + $0xf8] sm:$0xff] }
 0x3a8   :  { %2156 = vmatprep.subr.bf16.mxu0 %v2155_v27  ;;  %v2219_v25 = vpack.c.bf16 %v869_v24, %v868_v23  ;;  %v1276_v24 = vld [vmem:[#allocation8 + $0x118] sm:$0xff] }
 0x3aa   :  { %2220 = vmatprep.subr.bf16.mxu1 %v2219_v25 }
 0x3ab   :  { %2158 = vmatpush3.bf16.msra.mxu0 %v2155_v27  ;;  %2222 = vmatpush3.bf16.msra.mxu1 %v2219_v25 }
 0x3ac   :  { %2160 = vmatprep.subr.bf16.mxu0 %v2159_v30  ;;  %2232 = vmatprep.subr.bf16.mxu1 %v2231_v35 }
 0x461   :  { %v1769_v62 = vpop.f32.mrb[8].mxu0 }
 0x462   :  { %v614_v1 = vpop.f32.mrb[9].mxu0 }
 0x463   :  { %1805 = vmatprep.mubr.f32.mxu0 %v614_v1 }
 0x464   :  { %1806 = vmatmul.mubr.f32.vlgmr.msra.gmra.mrb[12].mxu0 %v1769_v62  ;;  %v1085_v62 = vld [vmem:[#allocation7 + $0x178] sm:$0xff] }
 0x465   :  { %2162 = vmatpush3.bf16.msra.mxu0 %v2159_v30  ;;  %v1772_v7 = vpop.f32.mrb[10].mxu0  ;;  %v2259_v1 = vpack.c.bf16 %v1085_v62, %v1084_v61  ;;  %v1067_v61 = vld [vmem:[#allocation5 + $0x170] sm:$0xff]  ;;  %v1068_v62 = vld [vmem:[#allocation5 + $0x178] sm:$0xff] }
 0x466   :  { %v624_v8 = vpop.f32.mrb[11].mxu0  ;;  %2164 = vmatprep.subr.bf16.mxu0 %v2163_v2 }
 0x467   :  { %1808 = vmatprep.mubr.f32.mxu0 %v624_v8 }
 0x468   :  { %1809 = vmatmul.mubr.f32.gmra.mrb[14].mxu0 %v1772_v7 }
 0x469   :  { %2166 = vmatpush3.bf16.msra.mxu0 %v2163_v2  ;;  %1843 = vmatprep.mubr.f32.mxu0 %v544_v58  ;;  %v2187_v58 = vpack.c.bf16 %v649_v56, %v648_v22  ;;  %v1418_v2 = vld [vmem:[%s2762_s7 + $0x1] ss:$0 sm:$0xff]  ;;  %v1274_v56 = vld [vmem:[#allocation8 + $0x108] sm:$0xff] }
 0x46a   :  { %2168 = vmatprep.subr.bf16.mxu0 %v2167_v9  ;;  %v1273_v22 = vld [vmem:[#allocation8 + $0x100] sm:$0xff] }
 0x46b   :  { %v2295_v23 = vpack.c.bf16 %v1274_v56, %v1273_v22 }
 0x46d   :  { %2170 = vmatpush3.bf16.msra.mxu0 %v2167_v9 }
 0x46e   :  { %2172 = vmatprep.subr.bf16.mxu0 %v2171_v12 }
 0x471   :  { %2174 = vmatpush3.bf16.msra.mxu0 %v2171_v12 }
 0x472   :  { %2176 = vmatprep.subr.bf16.mxu0 %v2175_v15 }
 0x475   :  { %2178 = vmatpush3.bf16.msra.mxu0 %v2175_v15 }
 0x476   :  { %2180 = vmatprep.subr.bf16.mxu0 %v2179_v18 }
 0x479   :  { %2182 = vmatpush3.bf16.msra.mxu0 %v2179_v18 }
 0x47a   :  { %2184 = vmatprep.subr.bf16.mxu0 %v2183_v21 }
 0x47d   :  { %2186 = vmatpush3.bf16.msra.mxu0 %v2183_v21  ;;  %v2263_v21 = vpack.c.bf16 %v1054_v20, %v1053_v19  ;;  %v1426_v20 = vld [vmem:[%s2762_s7 + $0x2] ss:$0 sm:$0xff] }
 0x47e   :  { %2188 = vmatprep.subr.bf16.mxu0 %v2187_v58 }
 0x481   :  { %2190 = vmatpush3.bf16.msra.mxu0 %v2187_v58  ;;  %v1275_v58 = vld [vmem:[#allocation8 + $0x110] sm:$0xff] }
 0x482   :  { %v2299_v25 = vpack.c.bf16 %v1276_v24, %v1275_v58 }
 0x484   :  { %1844 = vmatmul.mubr.f32.vlgmr.msra.gmra.mrb[12].mxu0 %v545_v57 }
 0x485   :  { %1846 = vmatprep.mubr.f32.mxu0 %v546_v3 }
 0x488   :  { %1847 = vmatmul.mubr.f32.gmra.mrb[14].mxu0 %v547_v0 }
 0x489   :  { %1895 = vmatprep.mubr.msk.f32.mxu0 %vm121_vm0, %v2606_v5 }
 0x557   :  { %v1845_v54 = vpop.f32.mrb[12].mxu0 }
 0x558   :  { %v846_v57 = vadd.f32 %v1845_v54, %v1416_v26  ;;  %v818_v27 = vpop.f32.mrb[13].mxu0  ;;  %v1278_v54 = vld [vmem:[#allocation8 + $0x128] sm:$0xff] }
 0x559   :  { %v845_v63 = vadd.f32 %v1416_v26, %v818_v27  ;;  %v1281_v27 = vld [vmem:[#allocation8 + $0x140] sm:$0xff] }
 0x55a   :  { %v850_v60 = vmax.f32 %v846_v57, 0.0  ;;  %v1280_v57 = vld [vmem:[#allocation8 + $0x138] sm:$0xff] }
 0x55b   :  { %v849_v3 = vmax.f32 %v845_v63, 0.0  ;;  %v1848_v28 = vpop.f32.mrb[14].mxu0  ;;  %v1282_v63 = vld [vmem:[#allocation8 + $0x148] sm:$0xff] }
 0x55c   :  { %v848_v0 = vadd.f32 %v1848_v28, %v1416_v26  ;;  %v828_v29 = vpop.f32.mrb[15].mxu0  ;;  %v1283_v28 = vld [vmem:[#allocation8 + $0x150] sm:$0xff] }
 0x55d   :  { %v847_v30 = vadd.f32 %v1416_v26, %v828_v29  ;;  %1881 = vmatprep.mubr.f32.mxu1 %v849_v3  ;;  %v1277_v26 = vld [vmem:[#allocation8 + $0x120] sm:$0xff]  ;;  %v2311_v3 = vpack.c.bf16 %v1282_v63, %v1281_v27 }
 0x55e   :  { %1882 = vmatmul.mubr.f32.vlgmr.msra.gmra.mrb[4].mxu1 %v850_v60  ;;  %v852_v31 = vmax.f32 %v848_v0, 0.0  ;;  %v1284_v60 = vld [vmem:[#allocation8 + $0x158] sm:$0xff]  ;;  %v1285_v29 = vld [vmem:[#allocation8 + $0x160] sm:$0xff] }
 0x55f   :  { %v851_v5 = vmax.f32 %v847_v30, 0.0  ;;  %2234 = vmatpush3.bf16.msra.mxu1 %v2231_v35  ;;  %v2315_v0 = vpack.c.bf16 %v1284_v60, %v1283_v28  ;;  %v1286_v30 = vld [vmem:[#allocation8 + $0x168] sm:$0xff] }
 0x560   :  { %2236 = vmatprep.subr.bf16.mxu1 %v2235_v37 }
 0x561   :  { %1884 = vmatprep.mubr.f32.mxu1 %v851_v5  ;;  %v2319_v5 = vpack.c.bf16 %v1286_v30, %v1285_v29 }
 0x562   :  { %1885 = vmatmul.mubr.f32.gmra.mrb[6].mxu1 %v852_v31  ;;  %v1055_v31 = vld [vmem:[#allocation5 + $0x110] sm:$0xff] }
 0x563   :  { %2238 = vmatpush3.bf16.msra.mxu1 %v2235_v37  ;;  %v2267_v35 = vpack.c.bf16 %v1056_v32, %v1055_v31  ;;  %v1058_v37 = vld [vmem:[#allocation5 + $0x128] sm:$0xff] }
 0x564   :  { %2240 = vmatprep.subr.bf16.mxu1 %v2239_v43 }
 0x567   :  { %2242 = vmatpush3.bf16.msra.mxu1 %v2239_v43  ;;  %v2271_v43 = vpack.c.bf16 %v1058_v37, %v1057_v36 }
 0x568   :  { %2244 = vmatprep.subr.bf16.mxu1 %v2243_v41 }
 0x56b   :  { %2246 = vmatpush3.bf16.msra.mxu1 %v2243_v41  ;;  %v2275_v41 = vpack.c.bf16 %v1060_v48, %v1059_v47 }
 0x56c   :  { %2248 = vmatprep.subr.bf16.mxu1 %v2247_v50 }
 0x56f   :  { %2250 = vmatpush3.bf16.msra.mxu1 %v2247_v50  ;;  %v2279_v50 = vpack.c.bf16 %v1062_v38, %v1061_v49 }
 0x570   :  { %2252 = vmatprep.subr.bf16.mxu1 %v2251_v52 }
 0x573   :  { %2254 = vmatpush3.bf16.msra.mxu1 %v2251_v52  ;;  %v2283_v52 = vpack.c.bf16 %v1064_v51, %v1063_v40 }
 0x574   :  { %2256 = vmatprep.subr.bf16.mxu1 %v2255_v59 }
 0x577   :  { %2258 = vmatpush3.bf16.msra.mxu1 %v2255_v59  ;;  %v2287_v59 = vpack.c.bf16 %v1066_v55, %v1065_v53 }
 0x578   :  { %2260 = vmatprep.subr.bf16.mxu1 %v2259_v1 }
 0x57b   :  { %2262 = vmatpush3.bf16.msra.mxu1 %v2259_v1  ;;  %v2291_v1 = vpack.c.bf16 %v1068_v62, %v1067_v61 }
 0x57c   :  { %2264 = vmatprep.subr.bf16.mxu1 %v2263_v21 }
 0x631   :  { %v1883_v4 = vpop.f32.mrb[4].mxu1 }
 0x632   :  { %v2700_v6 = vadd.f32 %v1883_v4, %v1418_v2  ;;  %v944_v7 = vpop.f32.mrb[5].mxu1  ;;  %v1288_v4 = vld [vmem:[#allocation8 + $0x178] sm:$0xff] }
 0x633   :  { %v2702_v8 = vadd.f32 %v1418_v2, %v944_v7 }
 0x634   :  { %v964_v9 = vmax.f32 %v2700_v6, 0.0 }
 0x635   :  { %v963_v10 = vmax.f32 %v2702_v8, 0.0  ;;  %v1886_v11 = vpop.f32.mrb[6].mxu1  ;;  %v1424_v8 = vld [vmem:[%s2760_s5 + $0x2] ss:$0 sm:$0xff]  ;;  %s2474_s5 = smov [#allocation10]  }
 0x636   :  { %v2706_v12 = vadd.f32 %v1886_v11, %v1418_v2  ;;  %v954_v13 = vpop.f32.mrb[7].mxu1  ;;  %s1391_s13 = sshll.u32 %s2474_s5, 4  ;;  %s1392_s13 = int_to_ptr.vmem [resolvable:$true] %s1391_s13 }
 0x637   :  { %v2223_v14 = vpack.c.bf16 %v964_v9, %v963_v10  ;;  %v2712_v15 = vadd.f32 %v1418_v2, %v954_v13  ;;  %v1287_v2 = vld [vmem:[#allocation8 + $0x170] sm:$0xff]  ;;  %s2437_s14 = scalar_lea.vmem %s1392_s13, 512  ;;  %p2442_p5 = scmp.lt.s32.totalorder %s1392_s13, %s1392_s13 }
 0x638   :  { %v966_v16 = vmax.f32 %v2706_v12, 0.0  ;;  %v2323_v7 = vpack.c.bf16 %v1288_v4, %v1287_v2  ;;  %p2438_p4 = scmp.ne.s32.totalorder %s1392_s13, %s2437_s14  ;;  %p2443_p6 = scmp.lt.s32.totalorder %s2437_s14, %s2437_s14 }
 0x639   :  { %v965_v17 = vmax.f32 %v2712_v15, 0.0  ;;  %2224 = vmatprep.subr.bf16.mxu0 %v2223_v14 }
 0x63a   :  { %2226 = vmatpush3.bf16.msra.mxu0 %v2223_v14  ;;  %p2444_p7 = por %p2443_p6, %p2442_p5 }
 0x63b   :  { %v2227_v18 = vpack.c.bf16 %v966_v16, %v965_v17 }
 0x63c   :  { %p2445_p8 = pnand %p2444_p7, %p2438_p4 }
 0x63d   :  { %2228 = vmatprep.subr.bf16.mxu0 %v2227_v18 }
 0x63e   :  { %2230 = vmatpush3.bf16.msra.mxu0 %v2227_v18 }
 0x63f   :  { %2296 = vmatprep.subr.bf16.mxu0 %v2295_v23 }
 0x641   :  { %1896 = vmatmul.mubr.msk.f32.vlgmr.msra.gmra.mrb[16].mxu0 %vm121_vm0, %v2634_v44  ;;  %v2303_v44 = vpack.c.bf16 %v1278_v54, %v1277_v26 }
 0x642   :  { %1898 = vmatprep.mubr.msk.f32.mxu0 %vm121_vm0, %v2636_v45  ;;  %2298 = vmatpush3.bf16.msra.mxu0 %v2295_v23  ;;  %v1279_v45 = vld [vmem:[#allocation8 + $0x130] sm:$0xff] }
 0x643   :  { %2300 = vmatprep.subr.bf16.mxu0 %v2299_v25 }
 0x645   :  { %1899 = vmatmul.mubr.msk.f32.gmra.mrb[18].mxu0 %vm121_vm0, %v2642_v46  ;;  %v2307_v46 = vpack.c.bf16 %v1280_v57, %v1279_v45 }
 0x646   :  { %2302 = vmatpush3.bf16.msra.mxu0 %v2299_v25 }
 0x647   :  { %2304 = vmatprep.subr.bf16.mxu0 %v2303_v44 }
 0x64a   :  { %2306 = vmatpush3.bf16.msra.mxu0 %v2303_v44 }
 0x64b   :  { %2308 = vmatprep.subr.bf16.mxu0 %v2307_v46 }
 0x64e   :  { %2310 = vmatpush3.bf16.msra.mxu0 %v2307_v46 }
 0x64f   :  { %2312 = vmatprep.subr.bf16.mxu0 %v2311_v3 }
 0x652   :  { %2314 = vmatpush3.bf16.msra.mxu0 %v2311_v3 }
 0x653   :  { %2316 = vmatprep.subr.bf16.mxu0 %v2315_v0 }
 0x656   :  { %2318 = vmatpush3.bf16.msra.mxu0 %v2315_v0 }
 0x657   :  { %2320 = vmatprep.subr.bf16.mxu0 %v2319_v5 }
 0x65a   :  { %2322 = vmatpush3.bf16.msra.mxu0 %v2319_v5 }
 0x65b   :  { %2324 = vmatprep.subr.bf16.mxu0 %v2323_v7 }
 0x65e   :  { %2326 = vmatpush3.bf16.msra.mxu0 %v2323_v7 }
 0x714   :  { %v1897_v33 = vpop.f32.mrb[16].mxu0 }
 0x715   :  { %v1033_v34 = vpop.f32.mrb[17].mxu0 }
 0x716   :  { %1933 = vmatprep.mubr.f32.mxu1 %v1033_v34 }
 0x717   :  { %1934 = vmatmul.mubr.f32.vlgmr.msra.gmra.mrb[8].mxu1 %v1897_v33 }
 0x718   :  { %2266 = vmatpush3.bf16.msra.mxu1 %v2263_v21  ;;  %v1900_v39 = vpop.f32.mrb[18].mxu0 }
 0x719   :  { %v1043_v42 = vpop.f32.mrb[19].mxu0  ;;  %2268 = vmatprep.subr.bf16.mxu1 %v2267_v35 }
 0x71a   :  { %1936 = vmatprep.mubr.f32.mxu1 %v1043_v42 }
 0x71b   :  { %1937 = vmatmul.mubr.f32.gmra.mrb[10].mxu1 %v1900_v39 }
 0x71c   :  { %2270 = vmatpush3.bf16.msra.mxu1 %v2267_v35  ;;  %1971 = vmatprep.mubr.f32.mxu1 %v963_v10 }
 0x71d   :  { %2272 = vmatprep.subr.bf16.mxu1 %v2271_v43 }
 0x720   :  { %2274 = vmatpush3.bf16.msra.mxu1 %v2271_v43 }
 0x721   :  { %2276 = vmatprep.subr.bf16.mxu1 %v2275_v41 }
 0x724   :  { %2278 = vmatpush3.bf16.msra.mxu1 %v2275_v41 }
 0x725   :  { %2280 = vmatprep.subr.bf16.mxu1 %v2279_v50 }
 0x728   :  { %2282 = vmatpush3.bf16.msra.mxu1 %v2279_v50 }
 0x729   :  { %2284 = vmatprep.subr.bf16.mxu1 %v2283_v52 }
 0x72c   :  { %2286 = vmatpush3.bf16.msra.mxu1 %v2283_v52 }
 0x72d   :  { %2288 = vmatprep.subr.bf16.mxu1 %v2287_v59 }
 0x730   :  { %2290 = vmatpush3.bf16.msra.mxu1 %v2287_v59 }
 0x731   :  { %2292 = vmatprep.subr.bf16.mxu1 %v2291_v1 }
 0x734   :  { %2294 = vmatpush3.bf16.msra.mxu1 %v2291_v1 }
 0x737   :  { %1972 = vmatmul.mubr.f32.vlgmr.msra.gmra.mrb[8].mxu1 %v964_v9 }
 0x738   :  { %1974 = vmatprep.mubr.f32.mxu1 %v965_v17 }
 0x73b   :  { %1975 = vmatmul.mubr.f32.gmra.mrb[10].mxu1 %v966_v16 }
 0x80a   :  { %v1973_v10 = vpop.f32.mrb[8].mxu1 }
 0x80b   :  { %v1265_v11 = vadd.f32 %v1973_v10, %v1424_v8  ;;  %v1237_v13 = vpop.f32.mrb[9].mxu1 }
 0x80c   :  { %v1264_v6 = vadd.f32 %v1424_v8, %v1237_v13 }
 0x80d   :  { %v1269_v15 = vmax.f32 %v1265_v11, 0.0 }
 0x80e   :  { %v1268_v9 = vmax.f32 %v1264_v6, 0.0  ;;  %v1976_v14 = vpop.f32.mrb[10].mxu1 }
 0x80f   :  { %v1267_v17 = vadd.f32 %v1976_v14, %v1424_v8  ;;  %v1247_v18 = vpop.f32.mrb[11].mxu1 }
 0x810   :  { %v1266_v12 = vadd.f32 %v1424_v8, %v1247_v18  ;;  %2009 = vmatprep.mubr.f32.mxu0 %v1268_v9 }
 0x811   :  { %2010 = vmatmul.mubr.f32.vlgmr.msra.gmra.mrb[20].mxu0 %v1269_v15  ;;  %v1271_v19 = vmax.f32 %v1267_v17, 0.0 }
 0x812   :  { %v1270_v16 = vmax.f32 %v1266_v12, 0.0 }
 0x814   :  { %2012 = vmatprep.mubr.f32.mxu0 %v1270_v16 }
 0x815   :  { %2013 = vmatmul.mubr.f32.gmra.mrb[22].mxu0 %v1271_v19 }
 0x8e4   :  { %v2011_v21 = vpop.f32.mrb[20].mxu0 }
 0x8e5   :  { %v1369_v22 = vadd.f32 %v2011_v21, %v1426_v20  ;;  %v1363_v56 = vpop.f32.mrb[21].mxu0 }
 0x8e6   :  { %v1364_v58 = vadd.f32 %v1426_v20, %v1363_v56 }
 0x8e7   :  { %1383 = vst [vmem:[#allocation10 + $0x8] sm:$0xff] %v1369_v22 }
 0x8e8   :  { %1382 = vst [vmem:[#allocation10] sm:$0xff] %v1364_v58  ;;  %v2014_v23 = vpop.f32.mrb[22].mxu0 }
 0x8e9   :  { %v1379_v24 = vadd.f32 %v2014_v23, %v1426_v20  ;;  %v1373_v25 = vpop.f32.mrb[23].mxu0 }
 0x8ea   :  { %v1374_v26 = vadd.f32 %v1426_v20, %v1373_v25 }
 0x8eb   :  { %1385 = vst [vmem:[#allocation10 + $0x18] sm:$0xff] %v1379_v24 }
 0x8ec   :  { %1384 = vst [vmem:[#allocation10 + $0x10] sm:$0xff] %v1374_v26 }
 0x8ed   :  { %2448 = shalt.err (!%p2445_p8)
}
 0x8ee   :  { %s2449_s12 = scalar_lea.hbm %s2763_s8, 512 }
 0x8ef   :  { %p2450_p9 = scmp.ne.s32.totalorder %s2763_s8, %s2449_s12  ;;  %p2453_p10 = scmp.lt.u32.totalorder %s2449_s12, %s2763_s8 }
 0x8f1   :  { %p2455_p11 = pnand %p2453_p10, %p2450_p9 }
 0x8f3   :  { %2458 = shalt.err (!%p2455_p11)
}
 0x8f4   :  { %1397 = dma.vmem_to_hbm [thread:$0]  %s1392_s13, 512, %s2763_s8, [#allocation4], %s2469_s17, %s2469_s17, %s2470_s18  }
 0x8f5   :  { %2465 = dma.done.wait [#allocation4], 512  }
 0x8f6   :  { %2466 = vsyncadd [#allocation4], 4294966784 }
 0x8f7   :  { %1401 = vsyncpa [#allocation3], 1 }
 0x8f8   :  { %1402 = vsyncpa [#allocation6], 1 }
 0x8f9   :  { %1403 = vsyncpa [#allocation9], 1 }
 0x8fa   :  { %1404 = vsyncpa [#allocation4], 1 }

</bundles_post_ra>
